<compile_context>
chip_gen: v6e
topology: v6e:2x2x1
jax: 0.10.0
libtpu: 0.0.40
codegen_flags: <defaults>
</compile_context>

<pallas_src>
import math

import jax
import jax.numpy as jnp
from jax import lax
from jax.experimental import pallas as pl
from jax.experimental.pallas import tpu as pltpu


_INV_SQRT2 = 1.0 / math.sqrt(2.0)


def _proj_gelu_mask_kernel(feat_ref, w_ref, b_ref, out_ref, mask_ref):
    """feat_ref: (C, tS) f32/bf16   w_ref: (Dp, C) bf16   b_ref: (Dp, 1) f32
       out_ref: (Dp, tS) f32        mask_ref: (1, tS) f32"""
    x = feat_ref[...]                                          # (C, tS)

    # generate_padding_mask: sum over the channel dim == padding_idx * C (= 0)
    # -> bool -> long -> * -100000.0.  Emitted lane-dense as (1, tS).
    colsum = jnp.sum(x.astype(jnp.float32), axis=0, keepdims=True)   # (1, tS)
    mask_ref[...] = jnp.where(colsum == 0.0,
                              jnp.float32(-100000.0), jnp.float32(0.0))

    # nn.Linear computed in the (D, S) orientation so the NCHW feature tile
    # feeds the MXU with no transpose:  (Dp, C) @ (C, tS) -> (Dp, tS).
    # bf16 operands, f32 accumulation.
    y = jnp.dot(w_ref[...], x.astype(jnp.bfloat16),
                preferred_element_type=jnp.float32)
    y = y + b_ref[...]                                  # bias bcast over lanes

    # nn.GELU() default = exact erf-based GELU.
    g = 0.5 * y * (1.0 + lax.erf(y * _INV_SQRT2))

    # TODO(synk): nn.Dropout left as identity (eval semantics); torch RNG
    # dropout has no deterministic Pallas equivalent.
    out_ref[...] = g.astype(out_ref.dtype)


def _pick_s_tile(S):
    """Largest 128-aligned tile that divides S; fall back to the full extent
    (full-extent lane blocks are always legal)."""
    if S % 128 == 0:
        for cand in (512, 384, 256, 128):
            if S % cand == 0:
                return cand
    return S


def resnet_embedding_forward(features_nchw, w, b):
    """features_nchw: (B, C, H, W) backbone output (f32 or bf16)
       w: (D, C) projection weight (torch nn.Linear layout)
       b: (D,)   projection bias
       returns (out (B, S, D) f32, padding_mask (B, 1, 1, S) f32), S = H*W."""
    B, C, H, W = features_nchw.shape
    D = w.shape[0]
    S = H * W

    # Free view (no data movement): NCHW -> (B, C, S).  The big feature map is
    # never transposed in HBM; the kernel contracts over C directly.
    feats = features_nchw.reshape(B, C, S)

    # Pad the d_model dim to a multiple of 128 (MXU rows / full vector stores).
    Dp = max(128, ((D + 127) // 128) * 128)
    w_p = jnp.zeros((Dp, C), jnp.bfloat16).at[:D, :].set(w.astype(jnp.bfloat16))
    b_p = jnp.zeros((Dp, 1), jnp.float32).at[:D, 0].set(b.astype(jnp.float32))

    tS = _pick_s_tile(S)
    grid = (B, S // tS)

    out_t, mask = pl.pallas_call(
        _proj_gelu_mask_kernel,
        out_shape=(
            jax.ShapeDtypeStruct((B, Dp, S), jnp.float32),
            jax.ShapeDtypeStruct((B, 1, S), jnp.float32),
        ),
        grid_spec=pltpu.PrefetchScalarGridSpec(
            num_scalar_prefetch=0,
            grid=grid,
            in_specs=[
                # (C, tS) feature tile straight out of the NCHW layout
                pl.BlockSpec((None, C, tS), lambda bi, si: (bi, 0, si)),
                # full weight / bias, resident across the grid
                pl.BlockSpec((Dp, C), lambda bi, si: (0, 0)),
                pl.BlockSpec((Dp, 1), lambda bi, si: (0, 0)),
            ],
            out_specs=[
                pl.BlockSpec((None, Dp, tS), lambda bi, si: (bi, 0, si)),
                pl.BlockSpec((None, 1, tS), lambda bi, si: (bi, 0, si)),
            ],
        ),
        compiler_params=pltpu.CompilerParams(
            dimension_semantics=("parallel", "parallel"),
            vmem_limit_bytes=32 * 1024 * 1024,   # safe on v5e/v6e/v7x
        ),
    )(feats, w_p, b_p)

    # Only the small (B, D, S) projected output is cropped + transposed here.
    out = out_t[:, :D, :].transpose(0, 2, 1)             # (B, S, D)
    padding_mask = mask.reshape(B, 1, 1, S)               # (B, 1, 1, S)
    return out, padding_mask


if __name__ == "__main__":
    # Small, module-consistent shapes:
    #   d_features (backbone channels) = 256, d_model = 96 (pads to 128),
    #   spatial = 16x16 -> S = 256 (one lane-dense 256-wide tile per image).
    B, C, H, W = 2, 256, 16, 16
    D = 96
    S = H * W

    key = jax.random.PRNGKey(0)
    k_feat, k_w, k_b = jax.random.split(key, 3)

    features = jax.random.normal(k_feat, (B, C, H, W), dtype=jnp.float32)
    # force one spatial position to be all-zero so the padding-mask branch fires
    features = features.at[1, :, 0, 0].set(0.0)

    # deterministic "Linear(d_features, d_model)" params (torch (D, C) layout)
    w = jax.random.normal(k_w, (D, C), dtype=jnp.float32) * (1.0 / math.sqrt(C))
    b = jax.random.normal(k_b, (D,), dtype=jnp.float32) * 0.01

    out, padding_mask = resnet_embedding_forward(features, w, b)
    jax.block_until_ready(out)
    jax.block_until_ready(padding_mask)

    # pure-JAX reference (bf16 matmul inputs, f32 accumulation, like the kernel)
    feats_ref = features.reshape(B, C, S).transpose(0, 2, 1)        # (B, S, C)
    x_bf = feats_ref.astype(jnp.bfloat16).astype(jnp.float32)
    w_bf = w.astype(jnp.bfloat16).astype(jnp.float32)
    y_ref = jnp.einsum("bsc,dc->bsd", x_bf, w_bf) + b
    out_ref = 0.5 * y_ref * (1.0 + lax.erf(y_ref / math.sqrt(2.0)))
    mask_ref = jnp.where(jnp.sum(feats_ref, axis=-1) == 0.0, -100000.0, 0.0)
    mask_ref = mask_ref[:, None, None, :]

    assert out.shape == (B, S, D)
    assert padding_mask.shape == (B, 1, 1, S)
    assert jnp.allclose(out, out_ref, atol=1e-2, rtol=1e-2)
    assert jnp.allclose(padding_mask, mask_ref)

    print("KERNEL_OK")
</pallas_src>

<mosaic_0001>
module attributes {stable_mosaic.version = 11 : i64} {
  func.func @_proj_gelu_mask_kernel(%arg0: i32, %arg1: i32, %arg2: memref<1x256x256xf32, #tpu.memory_space<vmem>>, %arg3: memref<128x256xbf16, #tpu.memory_space<vmem>>, %arg4: memref<128x1xf32, #tpu.memory_space<vmem>>, %arg5: memref<1x128x256xf32, #tpu.memory_space<vmem>>, %arg6: memref<1x1x256xf32, #tpu.memory_space<vmem>>) attributes {dimension_semantics = [#tpu.dimension_semantics<parallel>, #tpu.dimension_semantics<parallel>], iteration_bounds = array<i64: 2, 1>, scalar_prefetch = 0 : i64, scratch_operands = 0 : i64, tpu.core_type = #tpu.core_type<tc>, window_params = [{transform_indices = @transform_0, window_bounds = array<i64: 1, 256, 256>}, {pipeline_mode = #tpu.pipeline_mode<synchronous>, transform_indices = @transform_1, window_bounds = array<i64: 128, 256>}, {pipeline_mode = #tpu.pipeline_mode<synchronous>, transform_indices = @transform_2, window_bounds = array<i64: 128, 1>}, {transform_indices = @transform_3, window_bounds = array<i64: 1, 128, 256>}, {transform_indices = @transform_4, window_bounds = array<i64: 1, 1, 256>}]} {
    %c0 = arith.constant 0 : index
    %c0_0 = arith.constant 0 : index
    %c0_1 = arith.constant 0 : index
    %0 = vector.load %arg2[%c0, %c0_0, %c0_1] : memref<1x256x256xf32, #tpu.memory_space<vmem>>, vector<1x256x256xf32>
    %1 = vector.shape_cast %0 : vector<1x256x256xf32> to vector<256x256xf32>
    %cst = arith.constant dense<0.000000e+00> : vector<256xf32>
    %2 = vector.multi_reduction <add>, %1, %cst [0] : vector<256x256xf32> to vector<256xf32>
    %3 = vector.shape_cast %2 : vector<256xf32> to vector<1x256xf32>
    %cst_2 = arith.constant 0.000000e+00 : f32
    %4 = vector.broadcast %cst_2 : f32 to vector<1x256xf32>
    %5 = arith.cmpf oeq, %3, %4 : vector<1x256xf32>
    %cst_3 = arith.constant -1.000000e+05 : f32
    %cst_4 = arith.constant 0.000000e+00 : f32
    %6 = vector.broadcast %cst_3 : f32 to vector<1x256xf32>
    %7 = vector.broadcast %cst_4 : f32 to vector<1x256xf32>
    %8 = arith.select %5, %6, %7 : vector<1x256xi1>, vector<1x256xf32>
    %c0_5 = arith.constant 0 : index
    %c0_6 = arith.constant 0 : index
    %c0_7 = arith.constant 0 : index
    %9 = vector.load %arg6[%c0_5, %c0_6, %c0_7] : memref<1x1x256xf32, #tpu.memory_space<vmem>>, vector<1x1x256xf32>
    %10 = vector.shape_cast %9 : vector<1x1x256xf32> to vector<1x256xf32>
    %11 = vector.shape_cast %8 : vector<1x256xf32> to vector<1x1x256xf32>
    tpu.vector_store %arg6[%c0_5, %c0_6, %c0_7], %11 {strides = array<i32>} : memref<1x1x256xf32, #tpu.memory_space<vmem>>, vector<1x1x256xf32>,
    %c0_8 = arith.constant 0 : index
    %c0_9 = arith.constant 0 : index
    %12 = vector.load %arg3[%c0_8, %c0_9] : memref<128x256xbf16, #tpu.memory_space<vmem>>, vector<128x256xbf16>
    %13 = arith.truncf %1 : vector<256x256xf32> to vector<256x256xbf16>
    %cst_10 = arith.constant dense<0.000000e+00> : vector<128x256xf32>
    %14 = tpu.matmul %12, %13, %cst_10 {dimension_numbers = #tpu.dot_dimension_numbers<[1], [0], [0], [1], [0, 0, 1, 1], [], []>} : vector<128x256xbf16>, vector<256x256xbf16>, vector<128x256xf32> -> vector<128x256xf32>
    %c0_11 = arith.constant 0 : index
    %c0_12 = arith.constant 0 : index
    %15 = vector.load %arg4[%c0_11, %c0_12] : memref<128x1xf32, #tpu.memory_space<vmem>>, vector<128x1xf32>
    %16 = vector.broadcast %15 : vector<128x1xf32> to vector<128x256xf32>
    %17 = arith.addf %14, %16 : vector<128x256xf32>
    %cst_13 = arith.constant 5.000000e-01 : f32
    %18 = vector.broadcast %cst_13 : f32 to vector<128x256xf32>
    %19 = arith.mulf %18, %17 : vector<128x256xf32>
    %cst_14 = arith.constant 0.707106769 : f32
    %20 = vector.broadcast %cst_14 : f32 to vector<128x256xf32>
    %21 = arith.mulf %17, %20 : vector<128x256xf32>
    %22 = math.erf %21 : vector<128x256xf32>
    %cst_15 = arith.constant 1.000000e+00 : f32
    %23 = vector.broadcast %cst_15 : f32 to vector<128x256xf32>
    %24 = arith.addf %23, %22 : vector<128x256xf32>
    %25 = arith.mulf %19, %24 : vector<128x256xf32>
    %c0_16 = arith.constant 0 : index
    %c0_17 = arith.constant 0 : index
    %c0_18 = arith.constant 0 : index
    %26 = vector.load %arg5[%c0_16, %c0_17, %c0_18] : memref<1x128x256xf32, #tpu.memory_space<vmem>>, vector<1x128x256xf32>
    %27 = vector.shape_cast %26 : vector<1x128x256xf32> to vector<128x256xf32>
    %28 = vector.shape_cast %25 : vector<128x256xf32> to vector<1x128x256xf32>
    tpu.vector_store %arg5[%c0_16, %c0_17, %c0_18], %28 {strides = array<i32>} : memref<1x128x256xf32, #tpu.memory_space<vmem>>, vector<1x128x256xf32>,
    return
  }
  func.func @transform_0(%arg0: i32, %arg1: i32) -> (i32, i32, i32) {
    %c0_i32 = arith.constant 0 : i32
    %c0_i32_0 = arith.constant 0 : i32
    return %arg0, %c0_i32, %arg1 : i32, i32, i32
  }
  func.func @transform_1(%arg0: i32, %arg1: i32) -> (i32, i32) {
    %c0_i32 = arith.constant 0 : i32
    %c0_i32_0 = arith.constant 0 : i32
    %c0_i32_1 = arith.constant 0 : i32
    return %c0_i32, %c0_i32_0 : i32, i32
  }
  func.func @transform_2(%arg0: i32, %arg1: i32) -> (i32, i32) {
    %c0_i32 = arith.constant 0 : i32
    %c0_i32_0 = arith.constant 0 : i32
    %c0_i32_1 = arith.constant 0 : i32
    return %c0_i32, %c0_i32_0 : i32, i32
  }
  func.func @transform_3(%arg0: i32, %arg1: i32) -> (i32, i32, i32) {
    %c0_i32 = arith.constant 0 : i32
    %c0_i32_0 = arith.constant 0 : i32
    return %arg0, %c0_i32, %arg1 : i32, i32, i32
  }
  func.func @transform_4(%arg0: i32, %arg1: i32) -> (i32, i32, i32) {
    %c0_i32 = arith.constant 0 : i32
    %c0_i32_0 = arith.constant 0 : i32
    return %arg0, %c0_i32, %arg1 : i32, i32, i32
  }
}

</mosaic_0001>

<bundles_post_ra>
// kernel: tpu_custom_call.1
= control target key start
LH: loop header
LB: loop body
LE: loop exit
PB: predicated region body
PF: predicated region fallthrough
CT: control target
= control target key end

     0   :  { %10 = vsyncpa [#allocation3], 0  ;;  %s2132_s0 = inlined_call_operand.hbm [shape: f32[2,256,256], index: 0, kind: input, shape index: {}]   ;;  %s2133_s1 = inlined_call_operand.vmem [shape: bf16[128,256], index: 1, kind: input, shape index: {}]   ;;  %s2134_s2 = inlined_call_operand.vmem [shape: f32[128,1], index: 2, kind: input, shape index: {}]   ;;  %s2135_s3 = inlined_call_operand.hbm [shape: f32[2,128,256], index: 3, kind: output, shape index: {0}]   ;;  %s2136_s4 = inlined_call_operand.hbm [shape: f32[2,1,256], index: 4, kind: output, shape index: {1}]  }
   0x1   :  { %12 = vsyncpa [#allocation3 + $0x1], 0 }
   0x2   :  { %13 = vsyncpa [#allocation4], 0 }
   0x3   :  { %15 = vsyncpa [#allocation4 + $0x1], 0 }
   0x4   :  { %16 = vsyncpa [#allocation7], 0 }
   0x5   :  { %18 = vsyncpa [#allocation7 + $0x1], 0  ;;  %s1512_s15 = smov 0   ;;  %s1514_s16 = smov 0  }
   0x6   :  { %s1516_s17 = smov 0   ;;  %s1518_s18 = smov 0  }
   0x7   :  { %s1520_s19 = smov 0   ;;  %s1522_s20 = smov 0  }
   0x8 LB: > { %s1103_s21 = sadd.s32 4294967295, %s1475_s20   ;;  %s1104_s22 = sadd.s32 4294967294, %s1475_s20   ;;  %s1475_s20 = sphi %s1522_s20, %s24_s20   ;;  %s1471_s19 = sphi %s1520_s19, %s2147_s19   ;;  %s1467_s18 = sphi %s1518_s18, %s2146_s18   ;;  %s1463_s17 = sphi %s1516_s17, %s2145_s17   ;;  %s1459_s16 = sphi %s1514_s16, %s2144_s16   ;;  %s1455_s15 = sphi %s1512_s15, %s2143_s15  }
   0x9   : > { %s36_s23 = sadd.s32 1, %s1471_s19  ;;  %s45_s24 = sadd.s32 1, %s1463_s17 }
   0xa   : > { %p38_p0 = scmp.ge.s32.totalorder %s36_s23, 2  ;;  %p52_p1 = scmp.ne.s32.totalorder %s1463_s17, %s1459_s16 }
   0xb   : > { %p53_p2 = scmp.eq.s32.totalorder %s1475_s20, 0  ;;  %p58_p3 = scmp.ne.s32.totalorder %s1459_s16, %s1455_s15 }
   0xc   : > { %s2149_s23 = smov (%p38_p0, %s36_s23), 0  ;;  %p59_p5 = scmp.eq.s32.totalorder %s1103_s21, 0 }
   0xd   : > { %p1553_p4 = por %p53_p2, %p52_p1  ;;  %s40_s26 = ssub.s32 %s1471_s19, %s2149_s23 }
   0xe   : > { %p126_p6 = scmp.eq.s32.totalorder %s1103_s21, 1  ;;  %p43_p7 = scmp.eq.s32.totalorder %s40_s26, 0 }
   0xf   : > { %p1559_p8 = por %p59_p5, %p58_p3  ;;  %p132_p10 = scmp.eq.s32.totalorder %s1104_s22, 1 }
  0x10   : > { %p1563_p9 = por %p126_p6, %p52_p1  ;;  %p1190_p13 = scmp.lt.s32.totalorder %s1475_s20, 2 }
  0x11   : > { %s1568_s29 = scalar_select %p43_p7, %s1463_s17, %s45_s24  }
  0x12   : > { %p1570_p11 = por %p132_p10, %p58_p3  ;;  %s186_s5 = sand.u32 1, %s1463_s17  }
  0x13   : > { %s1107_s6 = sshll.u32 %s186_s5, 9  ;;  %s1138_s7 = sshll.u32 %s1471_s19, 13 }
  0x14   : > { %s198_s10 = scalar_lea.hbm %s2132_s0, %s1138_s7  ;;  %s190_s11 = scalar_lea.vmem [#allocation2], %s1107_s6 }
  0x15   : > { %s199_s12 = sshll.u32 %s190_s11, 4  ;;  %p1583_p0 = pnand %p1190_p13, %p1553_p4  ;;  %s200_s12 = int_to_ptr.vmem [resolvable:$true] %s199_s12 }
  0x16   : > { %p1110_p1 = scmp.ge.s32.totalorder %s1475_s20, 1  ;;  %s187_s14 = scalar_lea.sflag [#allocation3], %s186_s5 }
  0x17   : > { %p1339_p2 = pneg %p1583_p0  ;;  %s1350_s21 = scalar_lea.vmem %s200_s12, 8192 }
  0x18   : > { %p1351_p3 = scmp.ne.s32.totalorder %s200_s12, %s1350_s21  ;;  %s1477_s22 = smov [#allocation2]  }
  0x19   : > { %s1355_s24 = sshll.u32 %s1477_s22, 4  ;;  %s1356_s24 = int_to_ptr.vmem [resolvable:$false] %s1355_s24 }
  0x1a   : > { %p1353_p5 = pnand %p1351_p3, %p1339_p2  ;;  %s1357_s26 = scalar_lea.vmem %s1356_s24, 16384 }
  0x1b   : > { %p1358_p7 = scmp.lt.s32.totalorder %s200_s12, %s1356_s24  ;;  %p1359_p10 = scmp.lt.s32.totalorder %s1357_s26, %s1350_s21 }
  0x1c   : > { %p1354_p6 = pneg %p1353_p5 }
  0x1d   : > { %p1360_p12 = por %p1359_p10, %p1358_p7 }
  0x1f   : > { %p1361_p4 = pnand %p1360_p12, %p1354_p6 }
  0x21   : > { %1364 = shalt.err (!%p1361_p4)
}
  0x22   : > { %s1478_s25 = smov 256   ;;  %s1479_s5 = smov 16  }
  0x23   : > { %1182 = dma.hbm_to_vmem [thread:$0]  (!%p1583_p0), %s198_s10, 8192, %s200_s12, %s187_s14, %s1478_s25, %s1478_s25, %s1479_s5  }
  0x24   : > { %p207_p13 = scmp.lt.s32.totalorder %s1475_s20, 3 }
  0x26   : > { %p208_p2 = pnand %p1110_p1, %p207_p13 }
  0x27   : > { %s1596_s6 = sand.u32 (!%p208_p2), 1, %s1459_s16  }
  0x28   : > { %211 = sbr.rel (%p208_p2) target bundleno = 388 (0x184), region = 32  ;;  %s1111_s7 = sshll.u32 (!%p208_p2), %s1596_s6, 9 }
  0x29   : > { %s214_s8 = scalar_lea.sflag (!%p208_p2), [#allocation3], %s1596_s6  ;;  %s1600_s9 = scalar_lea.vmem (!%p208_p2), [#allocation2], %s1111_s7 }
  0x2d   : > { %1442 = dma.done.wait (%p1559_p8), %s214_s8, 8192  }
  0x2e   : > { %1444 = vsyncadd (%p1559_p8), %s214_s8, 4294959104  ;;  %v1480_v0 = vmov 0   ;;  %v1607_v1 = vld [vmem:[%s1600_s9 + $0x8] sm:$0xff]  ;;  %v1610_v2 = vld [vmem:[%s1600_s9 + $0x18] sm:$0xff]  ;;  %s1113_s14 = sshll.u32 %s1596_s6, 1  ;;  %s1140_s22 = sshll.u32 %s1467_s18, 5 }
  0x2f   : > { %1248 = vset.pattern.permute.xlu1 %v1480_v0  ;;  %1247 = vset.pattern.permute.xlu0 %v1480_v0  ;;  %v351_v3 = vadd.f32 %v1610_v2, %v1607_v1  ;;  %v1615_v4 = vld [vmem:[%s1600_s9 + $0x28] sm:$0xff]  ;;  %v1619_v6 = vld [vmem:[%s1600_s9 + $0x38] sm:$0xff]  ;;  %v1629_v10 = vld [vmem:[%s1600_s9] sm:$0xff]  ;;  %s246_s21 = scalar_lea.vmem [#allocation6], %s1113_s14  ;;  %s982_s5 = scalar_lea.hbm %s2136_s4, %s1140_s22 }
  0x30   : > { %v1622_v7 = vld [vmem:[%s1600_s9 + $0xe8] sm:$0xff]  ;;  %v1625_v8 = vld [vmem:[%s1600_s9 + $0xf8] sm:$0xff]  ;;  %v1632_v11 = vld [vmem:[%s1600_s9 + $0x10] sm:$0xff]  ;;  %s984_s24 = sshll.u32 %s246_s21, 4  ;;  %s950_s7 = scalar_lea.sflag [#allocation7], %s1596_s6  ;;  %s985_s24 = int_to_ptr.vmem [resolvable:$true] %s984_s24 }
  0x31   : > { %v352_v5 = vadd.f32 %v351_v3, %v1615_v4  ;;  %v1635_v12 = vld [vmem:[%s1600_s9 + $0x48] sm:$0xff]  ;;  %v446_v13 = vpack.c.bf16 %v1625_v8, %v1622_v7  ;;  %v314_v14 = vadd.f32 %v1632_v11, %v1629_v10  ;;  %v1643_v16 = vld [vmem:[%s1600_s9 + $0xd8] sm:$0xff]  ;;  %v1647_v18 = vld [vmem:[%s1600_s9 + $0x20] sm:$0xff]  ;;  %s1365_s8 = scalar_lea.vmem %s985_s24, 32 }
  0x32   : > { %v275_v15 = vld [vmem:[%s1600_s9 + $0xc8] sm:$0xff]  ;;  %v1650_v19 = vld [vmem:[%s1600_s9 + $0x58] sm:$0xff]  ;;  %v1656_v23 = vld [vmem:[%s1600_s9 + $0x30] sm:$0xff]  ;;  %p1366_p8 = scmp.ne.s32.totalorder %s985_s24, %s1365_s8 }
  0x33   : > { %v353_v9 = vadd.f32 %v352_v5, %v1619_v6  ;;  %639 = vmatprep.subr.bf16.mxu0 %v446_v13  ;;  %1141 = vmatprep.subr.bf16.mxu1 %v446_v13  ;;  %v315_v20 = vadd.f32 %v314_v14, %v1647_v18  ;;  %v263_v21 = vld [vmem:[%s1600_s9 + $0x68] sm:$0xff]  ;;  %v1659_v24 = vld [vmem:[%s1600_s9 + $0xc0] sm:$0xff]  ;;  %v1662_v25 = vld [vmem:[%s1600_s9 + $0xd0] sm:$0xff]  ;;  %v444_v29 = vpack.c.bf16 %v1643_v16, %v275_v15 }
  0x34   : > { %v1665_v26 = vld [vmem:[%s1600_s9 + $0xe0] sm:$0xff]  ;;  %v1668_v27 = vld [vmem:[%s1600_s9 + $0xf0] sm:$0xff]  ;;  %v271_v30 = vld [vmem:[%s1600_s9 + $0xa8] sm:$0xff]  ;;  %v443_v39 = vpack.c.bf16 %v1662_v25, %v1659_v24  ;;  %v436_v14 = vpack.c.bf16 %v1650_v19, %v1635_v12  ;;  %p1367_p12 = pnand %p1366_p8, %p1563_p9 }
  0x35   : > { %v354_v17 = vadd.f32 %v353_v9, %v1635_v12  ;;  %v316_v28 = vadd.f32 %v315_v20, %v1656_v23  ;;  %v273_v31 = vld [vmem:[%s1600_s9 + $0xb8] sm:$0xff]  ;;  %v258_v33 = vld [vmem:[%s1600_s9 + $0x40] sm:$0xff]  ;;  %v445_v34 = vpack.c.bf16 %v1668_v27, %v1665_v26  ;;  %v260_v38 = vld [vmem:[%s1600_s9 + $0x50] sm:$0xff] }
  0x36   : > { %v265_v35 = vld [vmem:[%s1600_s9 + $0x78] sm:$0xff]  ;;  %v267_v40 = vld [vmem:[%s1600_s9 + $0x88] sm:$0xff]  ;;  %v270_v41 = vld [vmem:[%s1600_s9 + $0xa0] sm:$0xff]  ;;  %v442_v44 = vpack.c.bf16 %v273_v31, %v271_v30  ;;  %p1368_p0 = pneg %p1367_p12 }
  0x37   : > { %v355_v22 = vadd.f32 %v354_v17, %v1650_v19  ;;  %v317_v36 = vadd.f32 %v316_v28, %v258_v33  ;;  %640 = vmatpush1.bf16.msra.mxu0 %v445_v34  ;;  %1157 = vmatpush1.bf16.msra.mxu1 %v445_v34  ;;  %v272_v42 = vld [vmem:[%s1600_s9 + $0xb0] sm:$0xff]  ;;  %v269_v45 = vld [vmem:[%s1600_s9 + $0x98] sm:$0xff]  ;;  %v262_v47 = vld [vmem:[%s1600_s9 + $0x60] sm:$0xff]  ;;  %v438_v61 = vpack.c.bf16 %v265_v35, %v263_v21 }
  0x38   : > { %641 = vmatprep.subr.bf16.mxu0 %v444_v29  ;;  %1142 = vmatprep.subr.bf16.mxu1 %v444_v29  ;;  %v264_v50 = vld [vmem:[%s1600_s9 + $0x70] sm:$0xff]  ;;  %v441_v51 = vpack.c.bf16 %v272_v42, %v270_v41  ;;  %v266_v52 = vld [vmem:[%s1600_s9 + $0x80] sm:$0xff]  ;;  %v440_v55 = vpack.c.bf16 %v269_v45, %v267_v40  ;;  %v1705_v12 = vld [vmem:[%s1600_s9 + $0x108] sm:$0xff]  ;;  %v432_v28 = vpack.c.bf16 %v1610_v2, %v1607_v1 }
  0x39   : > { %v356_v32 = vadd.f32 %v355_v22, %v263_v21  ;;  %v318_v43 = vadd.f32 %v317_v36, %v260_v38  ;;  %v268_v53 = vld [vmem:[%s1600_s9 + $0x90] sm:$0xff]  ;;  %v1251_v62 = vld [vmem:[%s2133_s1 + $0x4] ss:$8 sps:$4 sm:$0xff]   ;;  %v437_v9 = vpack.c.bf16 %v264_v50, %v262_v47  ;;  %v434_v22 = vpack.c.bf16 %v1619_v6, %v1615_v4  ;;  %v466_v2 = vld [vmem:[%s2134_s2 + $0x18] sm:$0xff] }
  0x3a   : > { %v439_v59 = vpack.c.bf16 %v268_v53, %v266_v52  ;;  %v1254_v0 = vld [vmem:[%s2133_s1 + $0x44] ss:$8 sps:$4 sm:$0xff]   ;;  %671 = vmatprep.mubr.bf16.mxu0 %v1251_v62  ;;  %v433_v4 = vpack.c.bf16 %v1656_v23, %v1647_v18  ;;  %v1738_v23 = vld [vmem:[%s1600_s9 + $0x138] sm:$0xff]  ;;  %v469_v62 = vld [vmem:[%s2134_s2 + $0x30] sm:$0xff] }
  0x3b   : > { %v357_v37 = vadd.f32 %v356_v32, %v265_v35  ;;  %v319_v48 = vadd.f32 %v318_v43, %v262_v47  ;;  %642 = vmatpush1.bf16.msra.mxu0 %v443_v39  ;;  %1158 = vmatpush1.bf16.msra.mxu1 %v443_v39  ;;  %v1725_v29 = vld [vmem:[%s1600_s9 + $0x128] sm:$0xff]  ;;  %v1735_v18 = vld [vmem:[%s1600_s9 + $0x100] sm:$0xff]  ;;  %v1751_v35 = vld [vmem:[%s1600_s9 + $0x110] sm:$0xff] }
  0x3c   : > { %643 = vmatprep.subr.bf16.mxu0 %v442_v44  ;;  %1143 = vmatprep.subr.bf16.mxu1 %v442_v44  ;;  %v1762_v39 = vld [vmem:[%s1600_s9 + $0x148] sm:$0xff]  ;;  %v1776_v43 = vld [vmem:[%s1600_s9 + $0x158] sm:$0xff] }
  0x3d   : > { %v358_v46 = vadd.f32 %v357_v37, %v267_v40  ;;  %v320_v54 = vadd.f32 %v319_v48, %v264_v50  ;;  %711 = vmatprep.mubr.bf16.mxu1 %v1254_v0  ;;  %v1756_v37 = vld [vmem:[%s1600_s9 + $0x1e0] sm:$0xff]  ;;  %v1788_v48 = vld [vmem:[%s1600_s9 + $0x130] sm:$0xff] }
  0x3e   : > { %v1817_v0 = vld [vmem:[%s1600_s9 + $0x150] sm:$0xff] }
  0x3f   : > { %v359_v49 = vadd.f32 %v358_v46, %v269_v45  ;;  %v321_v57 = vadd.f32 %v320_v54, %v266_v52  ;;  %644 = vmatpush1.bf16.msra.mxu0 %v441_v51  ;;  %1159 = vmatpush1.bf16.msra.mxu1 %v441_v51  ;;  %v468_v45 = vld [vmem:[%s2134_s2 + $0x28] sm:$0xff]  ;;  %v467_v46 = vld [vmem:[%s2134_s2 + $0x20] sm:$0xff]  ;;  %v1797_v52 = vld [vmem:[%s1600_s9 + $0x1d0] sm:$0xff] }
  0x40   : > { %645 = vmatprep.subr.bf16.mxu0 %v440_v55  ;;  %1144 = vmatprep.subr.bf16.mxu1 %v440_v55  ;;  %v1794_v51 = vld [vmem:[%s1600_s9 + $0x1c0] sm:$0xff]  ;;  %v303_v55 = vld [vmem:[%s1600_s9 + $0x1a8] sm:$0xff] }
  0x41   : > { %v360_v56 = vadd.f32 %v359_v49, %v271_v30  ;;  %v322_v60 = vadd.f32 %v321_v57, %v268_v53  ;;  %v1728_v30 = vld [vmem:[%s1600_s9 + $0x1e8] sm:$0xff]  ;;  %v1804_v57 = vld [vmem:[%s1600_s9 + $0x140] sm:$0xff] }
  0x42   : > { %v295_v53 = vld [vmem:[%s1600_s9 + $0x168] sm:$0xff] }
  0x43   : > { %v361_v58 = vadd.f32 %v360_v56, %v273_v31  ;;  %v323_v3 = vadd.f32 %v322_v60, %v270_v41  ;;  %646 = vmatpush1.bf16.msra.mxu0 %v439_v59  ;;  %1160 = vmatpush1.bf16.msra.mxu1 %v439_v59  ;;  %v1731_v31 = vld [vmem:[%s1600_s9 + $0x1f8] sm:$0xff]  ;;  %v1772_v41 = vld [vmem:[%s1600_s9 + $0x120] sm:$0xff] }
  0x44   : > { %647 = vmatprep.subr.bf16.mxu0 %v438_v61  ;;  %1145 = vmatprep.subr.bf16.mxu1 %v438_v61  ;;  %v462_v36 = vpack.c.bf16 %v1731_v31, %v1728_v30  ;;  %v305_v56 = vld [vmem:[%s1600_s9 + $0x1b8] sm:$0xff] }
  0x45   : > { %v362_v63 = vadd.f32 %v361_v58, %v275_v15  ;;  %v324_v13 = vadd.f32 %v323_v3, %v272_v42  ;;  %v297_v59 = vld [vmem:[%s1600_s9 + $0x178] sm:$0xff] }
  0x46   : > { %v470_v61 = vld [vmem:[%s2134_s2 + $0x38] sm:$0xff] }
  0x47   : > { %v363_v5 = vadd.f32 %v362_v63, %v1643_v16  ;;  %v325_v17 = vadd.f32 %v324_v13, %v1659_v24  ;;  %648 = vmatpush1.bf16.msra.mxu0 %v437_v9  ;;  %1161 = vmatpush1.bf16.msra.mxu1 %v437_v9  ;;  %v435_v16 = vpack.c.bf16 %v260_v38, %v258_v33  ;;  %v465_v24 = vld [vmem:[%s2134_s2 + $0x10] sm:$0xff]  ;;  %v302_v9 = vld [vmem:[%s1600_s9 + $0x1a0] sm:$0xff] }
  0x48   : > { %649 = vmatprep.subr.bf16.mxu0 %v436_v14  ;;  %1146 = vmatprep.subr.bf16.mxu1 %v436_v14  ;;  %v431_v33 = vpack.c.bf16 %v1632_v11, %v1629_v10  ;;  %v1759_v38 = vld [vmem:[%s1600_s9 + $0x1f0] sm:$0xff]  ;;  %v1766_v10 = vld [vmem:[%s1600_s9 + $0x1c8] sm:$0xff]  ;;  %v1769_v11 = vld [vmem:[%s1600_s9 + $0x1d8] sm:$0xff]  ;;  %v459_v63 = vpack.c.bf16 %v1797_v52, %v1794_v51 }
  0x49   : > { %v364_v15 = vadd.f32 %v363_v5, %v1622_v7  ;;  %v326_v21 = vadd.f32 %v325_v17, %v1662_v25  ;;  %v463_v25 = vld [vmem:[%s2134_s2] sm:$0xff]  ;;  %491 = vperm.xlu1 %1248, %v465_v24   ;;  %v461_v47 = vpack.c.bf16 %v1759_v38, %v1756_v37  ;;  %v460_v50 = vpack.c.bf16 %v1769_v11, %v1766_v10  ;;  %v304_v13 = vld [vmem:[%s1600_s9 + $0x1b0] sm:$0xff]  ;;  %v299_v14 = vld [vmem:[%s1600_s9 + $0x188] sm:$0xff] }
  0x4a   : > { %481 = vperm.xlu0 %1247, %v463_v25   ;;  %v458_v5 = vpack.c.bf16 %v305_v56, %v303_v55  ;;  %v301_v17 = vld [vmem:[%s1600_s9 + $0x198] sm:$0xff]  ;;  %v296_v24 = vld [vmem:[%s1600_s9 + $0x170] sm:$0xff] }
  0x4b   : > { %v365_v20 = vadd.f32 %v364_v15, %v1625_v8  ;;  %v327_v19 = vadd.f32 %v326_v21, %v1665_v26  ;;  %v1710_v8 = vld [vmem:[%s1600_s9 + $0x118] sm:$0xff]  ;;  %650 = vmatpush1.bf16.msra.mxu0 %v435_v16  ;;  %1162 = vmatpush1.bf16.msra.mxu1 %v435_v16 }
  0x4c   : > { %651 = vmatprep.subr.bf16.mxu0 %v434_v22  ;;  %1147 = vmatprep.subr.bf16.mxu1 %v434_v22  ;;  %v472_v22 = vld [vmem:[%s2134_s2 + $0x48] sm:$0xff] }
  0x4d   : > { %v366_v7 = vadd.f32 %v365_v20, %v1705_v12  ;;  %v328_v26 = vadd.f32 %v327_v19, %v1668_v27  ;;  %v464_v27 = vld [vmem:[%s2134_s2 + $0x8] sm:$0xff]  ;;  %496 = vperm.xlu1 %1248, %v466_v2   ;;  %v294_v20 = vld [vmem:[%s1600_s9 + $0x160] sm:$0xff]  ;;  %v457_v19 = vpack.c.bf16 %v304_v13, %v302_v9  ;;  %v474_v2 = vld [vmem:[%s2134_s2 + $0x58] sm:$0xff] }
  0x4e   : > { %486 = vperm.xlu0 %1247, %v464_v27   ;;  %v473_v27 = vld [vmem:[%s2134_s2 + $0x50] sm:$0xff] }
  0x4f   : > { %v367_v6 = vadd.f32 %v366_v7, %v1710_v8  ;;  %v329_v1 = vadd.f32 %v328_v26, %v1735_v18  ;;  %652 = vmatpush1.bf16.msra.mxu0 %v433_v4  ;;  %1163 = vmatpush1.bf16.msra.mxu1 %v433_v4  ;;  %v471_v7 = vld [vmem:[%s2134_s2 + $0x40] sm:$0xff]  ;;  %v456_v4 = vpack.c.bf16 %v301_v17, %v299_v14  ;;  %v300_v26 = vld [vmem:[%s1600_s9 + $0x190] sm:$0xff] }
  0x50   : > { %653 = vmatprep.subr.bf16.mxu0 %v432_v28  ;;  %1148 = vmatprep.subr.bf16.mxu1 %v432_v28 }
  0x51   : > { %v368_v32 = vadd.f32 %v367_v6, %v1725_v29  ;;  %v330_v40 = vadd.f32 %v329_v1, %v1751_v35  ;;  %506 = vperm.xlu1 %1248, %v468_v45   ;;  %v298_v6 = vld [vmem:[%s1600_s9 + $0x180] sm:$0xff]  ;;  %v476_v45 = vld [vmem:[%s2134_s2 + $0x68] sm:$0xff]  ;;  %s1483_s9 = smov [#allocation6]  }
  0x52   : > { %501 = vperm.xlu0 %1247, %v467_v46   ;;  %v475_v46 = vld [vmem:[%s2134_s2 + $0x60] sm:$0xff]  ;;  %s1369_s27 = sshll.u32 %s1483_s9, 4  ;;  %s1370_s27 = int_to_ptr.vmem [resolvable:$false] %s1369_s27 }
  0x53   : > { %v369_v34 = vadd.f32 %v368_v32, %v1738_v23  ;;  %v331_v44 = vadd.f32 %v330_v40, %v1772_v41  ;;  %654 = vmatpush1.bf16.msra.mxu0 %v431_v33  ;;  %1164 = vmatpush1.bf16.msra.mxu1 %v431_v33  ;;  %v455_v33 = vpack.c.bf16 %v300_v26, %v298_v6  ;;  %s1371_s10 = scalar_lea.vmem %s1370_s27, 64  ;;  %p1372_p1 = scmp.lt.s32.totalorder %s985_s24, %s1370_s27 }
  0x54   : > { %655 = vmatprep.subr.bf16.mxu0 %v462_v36  ;;  %1149 = vmatprep.subr.bf16.mxu1 %v462_v36  ;;  %v454_v36 = vpack.c.bf16 %v297_v59, %v295_v53  ;;  %p1373_p3 = scmp.lt.s32.totalorder %s1371_s10, %s1365_s8 }
  0x55   : > { %v370_v42 = vadd.f32 %v369_v34, %v1762_v39  ;;  %v332_v54 = vadd.f32 %v331_v44, %v1788_v48  ;;  %516 = vperm.xlu1 %1248, %v470_v61   ;;  %v1271_v61 = vld [vmem:[%s2133_s1 + $0x30] ss:$8 sps:$4 sm:$0xff]  }
  0x56   : > { %511 = vperm.xlu0 %1247, %v469_v62   ;;  %v1272_v62 = vld [vmem:[%s2133_s1 + $0x70] ss:$8 sps:$4 sm:$0xff]   ;;  %p1374_p5 = por %p1373_p3, %p1372_p1 }
  0x57   : > { %v371_v49 = vadd.f32 %v370_v42, %v1776_v43  ;;  %v333_v60 = vadd.f32 %v332_v54, %v1804_v57  ;;  %656 = vmatpush2.bf16.msra.mxu0 %v461_v47  ;;  %1165 = vmatpush2.bf16.msra.mxu1 %v461_v47  ;;  %v453_v47 = vpack.c.bf16 %v296_v24, %v294_v20  ;;  %v478_v54 = vld [vmem:[%s2134_s2 + $0x78] sm:$0xff] }
  0x58   : > { %657 = vmatprep.subr.bf16.mxu0 %v460_v50  ;;  %1150 = vmatprep.subr.bf16.mxu1 %v460_v50  ;;  %p1375_p6 = pnand %p1374_p5, %p1368_p0 }
  0x59   : > { %v372_v58 = vadd.f32 %v371_v49, %v295_v53  ;;  %v334_v15 = vadd.f32 %v333_v60, %v1817_v0  ;;  %526 = vperm.xlu1 %1248, %v472_v22   ;;  %v1269_v60 = vld [vmem:[%s2133_s1 + $0x74] ss:$8 sps:$4 sm:$0xff]  }
  0x5a   : > { %521 = vperm.xlu0 %1247, %v471_v7  }
  0x5b   : > { %v373_v3 = vadd.f32 %v372_v58, %v297_v59  ;;  %v335_v21 = vadd.f32 %v334_v15, %v294_v20  ;;  %658 = vmatpush2.bf16.msra.mxu0 %v459_v63  ;;  %1166 = vmatpush2.bf16.msra.mxu1 %v459_v63  ;;  %v1266_v58 = vld [vmem:[%s2133_s1 + $0x60] ss:$8 sps:$4 sm:$0xff]   ;;  %v1267_v59 = vld [vmem:[%s2133_s1 + $0x34] ss:$8 sps:$4 sm:$0xff]  }
  0x5c   : > { %659 = vmatprep.subr.bf16.mxu0 %v458_v5  ;;  %1151 = vmatprep.subr.bf16.mxu1 %v458_v5 }
  0x5d   : > { %v374_v16 = vadd.f32 %v373_v3, %v299_v14  ;;  %v336_v28 = vadd.f32 %v335_v21, %v296_v24  ;;  %536 = vperm.xlu1 %1248, %v474_v2  }
  0x5e   : > { %531 = vperm.xlu0 %1247, %v473_v27  }
  0x5f   : > { %v375_v25 = vadd.f32 %v374_v16, %v301_v17  ;;  %v337_v1 = vadd.f32 %v336_v28, %v298_v6  ;;  %660 = vmatpush2.bf16.msra.mxu0 %v457_v19  ;;  %1167 = vmatpush2.bf16.msra.mxu1 %v457_v19 }
  0x60   : > { %661 = vmatprep.subr.bf16.mxu0 %v456_v4  ;;  %1152 = vmatprep.subr.bf16.mxu1 %v456_v4 }
  0x61   : > { %v376_v32 = vadd.f32 %v375_v25, %v303_v55  ;;  %v338_v40 = vadd.f32 %v337_v1, %v300_v26  ;;  %546 = vperm.xlu1 %1248, %v476_v45   ;;  %v477_v55 = vld [vmem:[%s2134_s2 + $0x70] sm:$0xff] }
  0x62   : > { %541 = vperm.xlu0 %1247, %v475_v46  }
  0x63   : > { %v377_v34 = vadd.f32 %v376_v32, %v305_v56  ;;  %v339_v44 = vadd.f32 %v338_v40, %v302_v9  ;;  %662 = vmatpush2.bf16.msra.mxu0 %v455_v33  ;;  %1168 = vmatpush2.bf16.msra.mxu1 %v455_v33  ;;  %v448_v56 = vpack.c.bf16 %v1710_v8, %v1705_v12  ;;  %v1255_v12 = vld [vmem:[%s2133_s1 + $0x14] ss:$8 sps:$4 sm:$0xff]  }
  0x64   : > { %663 = vmatprep.subr.bf16.mxu0 %v454_v36  ;;  %1153 = vmatprep.subr.bf16.mxu1 %v454_v36  ;;  %v1257_v8 = vld [vmem:[%s2133_s1 + $0x54] ss:$8 sps:$4 sm:$0xff]  }
  0x65   : > { %v378_v42 = vadd.f32 %v377_v34, %v1766_v10  ;;  %v452_v10 = vpack.c.bf16 %v1776_v43, %v1762_v39  ;;  %v340_v50 = vadd.f32 %v339_v44, %v304_v13  ;;  %v450_v39 = vpack.c.bf16 %v1738_v23, %v1725_v29  ;;  %556 = vperm.xlu1 %1248, %v478_v54   ;;  %v1249_v29 = vld [vmem:[%s2133_s1] ss:$8 sps:$4 sm:$0xff]  }
  0x66   : > { %551 = vperm.xlu0 %1247, %v477_v55   ;;  %v1252_v23 = vld [vmem:[%s2133_s1 + $0x40] ss:$8 sps:$4 sm:$0xff]  }
  0x67   : > { %v379_v49 = vadd.f32 %v378_v42, %v1769_v11  ;;  %v341_v53 = vadd.f32 %v340_v50, %v1794_v51  ;;  %664 = vmatpush2.bf16.msra.mxu0 %v453_v47  ;;  %1169 = vmatpush2.bf16.msra.mxu1 %v453_v47  ;;  %v451_v11 = vpack.c.bf16 %v1817_v0, %v1804_v57 }
  0x68   : > { %665 = vmatprep.subr.bf16.mxu0 %v452_v10  ;;  %1154 = vmatprep.subr.bf16.mxu1 %v452_v10  ;;  %v449_v51 = vpack.c.bf16 %v1788_v48, %v1772_v41  ;;  %v447_v57 = vpack.c.bf16 %v1751_v35, %v1735_v18  ;;  %v1259_v18 = vld [vmem:[%s2133_s1 + $0x10] ss:$8 sps:$4 sm:$0xff]   ;;  %v1261_v41 = vld [vmem:[%s2133_s1 + $0x24] ss:$8 sps:$4 sm:$0xff]  }
  0x69   : > { %v342_v43 = vadd.f32 %v341_v53, %v1797_v52  ;;  %v1260_v35 = vld [vmem:[%s2133_s1 + $0x50] ss:$8 sps:$4 sm:$0xff]   ;;  %v1263_v48 = vld [vmem:[%s2133_s1 + $0x64] ss:$8 sps:$4 sm:$0xff]   ;;  %v1265_v52 = vld [vmem:[%s2133_s1 + $0x20] ss:$8 sps:$4 sm:$0xff]   ;;  %v380_v0 = vadd.f32 %v379_v49, %v1728_v30  ;;  %v398_v30 = vlaneseq }
  0x6b   : > { %666 = vmatpush2.bf16.msra.mxu0 %v451_v11  ;;  %1170 = vmatpush2.bf16.msra.mxu1 %v451_v11  ;;  %v343_v63 = vadd.f32 %v342_v43, %v1756_v37  ;;  %v381_v5 = vadd.f32 %v380_v0, %v1731_v31  ;;  %v1481_v37 = vmov 1966171168   ;;  %v399_v26 = vshrl.u32 %v398_v30, 7 }
  0x6c   : > { %667 = vmatprep.subr.bf16.mxu0 %v450_v39  ;;  %1155 = vmatprep.subr.bf16.mxu1 %v450_v39  ;;  %v396_v25 = vunpack.c.l.s4 %v1481_v37  ;;  %vm412_vm2 = vcmp.lt.s32.totalorder %v398_v30, 256 }
  0x6d   : > { %v344_v3 = vadd.f32 %v343_v63, %v1759_v38  ;;  %v382_v13 = vrot.slane %v381_v5, 4  ;;  %v1482_v38 = vmov 0.0  }
  0x6e   : > { %v397_v31 = vunpack.c.0.s8 %v396_v25 }
  0x6f   : > { %668 = vmatpush2.bf16.msra.mxu0 %v449_v51  ;;  %1171 = vmatpush2.bf16.msra.mxu1 %v449_v51  ;;  %v345_v9 = vrot.slane %v344_v3, 4  ;;  %v383_v15 = vadd.f32 %v382_v13, %v381_v5 }
  0x70   : > { %669 = vmatprep.subr.bf16.mxu0 %v448_v56  ;;  %1156 = vmatprep.subr.bf16.mxu1 %v448_v56  ;;  %v400_v32 = vsub.s32 %v397_v31, %v399_v26 }
  0x71   : > { %v346_v14 = vadd.f32 %v345_v9, %v344_v3  ;;  %v384_v20 = vrot.slane %v383_v15, 2 }
  0x73   : > { %670 = vmatpush2.bf16.msra.mxu0 %v447_v57  ;;  %1172 = vmatpush2.bf16.msra.mxu1 %v447_v57  ;;  %v347_v17 = vrot.slane %v346_v14, 2  ;;  %v385_v21 = vadd.f32 %v384_v20, %v383_v15 }
  0x75   : > { %v348_v16 = vadd.f32 %v347_v17, %v346_v14  ;;  %v386_v7 = vrot.slane %v385_v21, 1 }
  0x76   : > { %672 = vmatmul.mubr.bf16.vlgmr.msra.gmra.mxu0 %v1249_v29  ;;  %712 = vmatmul.mubr.bf16.vlgmr.msra.gmra.mxu1 %v1252_v23 }
  0x77   : > { %681 = vmatprep.mubr.bf16.mxu0 %v1255_v12  ;;  %721 = vmatprep.mubr.bf16.mxu1 %v1257_v8  ;;  %v349_v22 = vrot.slane %v348_v16, 1  ;;  %v387_v24 = vadd.f32 %v386_v7, %v385_v21 }
  0x79   : > { %v350_v19 = vadd.f32 %v349_v22, %v348_v16  ;;  %vm389_vm1 = vcmp.eq.f32.partialorder %v387_v24, 0.0 }
  0x7a   : > { %v391_v6 = vsel %vm389_vm1, -100000.0, %v1482_v38 }
  0x7b   : > { %vm388_vm0 = vcmp.eq.f32.partialorder %v350_v19, 0.0 }
  0x7c   : > { %v390_v4 = vsel %vm388_vm0, -100000.0, %v1482_v38 }
  0x7d   : > { %v394_v28 = vcombine.low %v390_v4, %v391_v6 }
  0x7e   : > { %682 = vmatmul.mubr.bf16.gmra.mxu0 %v1259_v18  ;;  %722 = vmatmul.mubr.bf16.gmra.mxu1 %v1260_v35 }
  0x7f   : > { %691 = vmatprep.mubr.bf16.mxu0 %v1261_v41  ;;  %731 = vmatprep.mubr.bf16.mxu1 %v1263_v48  ;;  %v401_v1 = vrot.slane %v394_v28, %v400_v32 }
  0x81   : > { %v408_v2 = vrot.slane %v401_v1, %v400_v32 }
  0x83   : > { %414 = vst.msk [vmem:[%s246_s21] sm:$0x3] %vm412_vm2, %v408_v2 }
  0x86   : > { %692 = vmatmul.mubr.bf16.gmra.mxu0 %v1265_v52  ;;  %732 = vmatmul.mubr.bf16.gmra.mxu1 %v1266_v58 }
  0x87   : > { %701 = vmatprep.mubr.bf16.mxu0 %v1267_v59  ;;  %741 = vmatprep.mubr.bf16.mxu1 %v1269_v60 }
  0x8e   : > { %702 = vmatmul.mubr.bf16.gmra.mxu0 %v1271_v61  ;;  %742 = vmatmul.mubr.bf16.gmra.mxu1 %v1272_v62 }
  0x8f   : > { %1378 = shalt.err (!%p1375_p6)
}
  0x90   : > { %s1379_s11 = scalar_lea.hbm %s982_s5, 32  ;;  %s1383_s14 = scalar_lea.hbm %s2136_s4, 64 }
  0x91   : > { %p1380_p7 = scmp.ne.s32.totalorder %s982_s5, %s1379_s11  ;;  %p1384_p13 = scmp.lt.s32.totalorder %s982_s5, %s2136_s4 }
  0x92   : > { %p1385_p2 = scmp.lt.s32.totalorder %s1383_s14, %s1379_s11 }
  0x93   : > { %p1381_p10 = pnand %p1380_p7, %p1563_p9 }
  0x94   : > { %p1386_p8 = por %p1385_p2, %p1384_p13 }
  0x95   : > { %p1382_p4 = pneg %p1381_p10 }
  0x97   : > { %p1387_p12 = pnand %p1386_p8, %p1382_p4 }
  0x99   : > { %1390 = shalt.err (!%p1387_p12)
}
  0x9a   : > { %1176 = dma.vmem_to_hbm [thread:$0]  (%p1563_p9), %s985_s24, 32, %s982_s5, %s950_s7  }
  0x9b   : > { %s1112_s24 = sshll.u32 %s1596_s6, 8  ;;  %s1139_s25 = sshll.u32 %s1467_s18, 12 }
  0x9c   : > { %s1975_s26 = scalar_lea.vmem [#allocation5], %s1112_s24  ;;  %s2081_s9 = scalar_lea.hbm %s2135_s3, %s1139_s25 }
  0x9d   : > { %s965_s5 = sshll.u32 %s1975_s26, 4  ;;  %s945_s18 = scalar_lea.sflag [#allocation4], %s1596_s6  ;;  %s2083_s5 = int_to_ptr.vmem [resolvable:$true] %s965_s5 }
  0x9e   : > { %s1391_s27 = scalar_lea.vmem %s2083_s5, 4096  ;;  %s1484_s10 = smov [#allocation5]  }
  0x9f   : > { %p1392_p0 = scmp.ne.s32.totalorder %s2083_s5, %s1391_s27  ;;  %s1395_s11 = sshll.u32 %s1484_s10, 4  ;;  %s1396_s11 = int_to_ptr.vmem [resolvable:$false] %s1395_s11 }
  0xa0   : > { %s1397_s12 = scalar_lea.vmem %s1396_s11, 8192  ;;  %p1398_p5 = scmp.lt.s32.totalorder %s2083_s5, %s1396_s11 }
  0xa1   : > { %p1393_p1 = pnand %p1392_p0, %p1563_p9  ;;  %p1399_p6 = scmp.lt.s32.totalorder %s1397_s12, %s1391_s27 }
  0xa3   : > { %p1394_p3 = pneg %p1393_p1  ;;  %p1400_p7 = por %p1399_p6, %p1398_p5 }
  0xa5   : > { %p1401_p10 = pnand %p1400_p7, %p1394_p3 }
  0xc4   : > { %v492_v33 = vpop.permute.xlu1 %491 }
  0xc5   : > { %v482_v27 = vpop.permute.xlu0 %481 }
  0xc8   : > { %v1932_v36 = vpop.permute.xlu1 %496 }
  0xc9   : > { %v487_v34 = vpop.permute.xlu0 %486 }
  0xcc   : > { %v1936_v42 = vpop.permute.xlu1 %506 }
  0xcd   : > { %v1934_v40 = vpop.permute.xlu0 %501 }
  0xd0   : > { %v1940_v45 = vpop.permute.xlu1 %516 }
  0xd1   : > { %v1938_v44 = vpop.permute.xlu0 %511 }
  0xd4   : > { %v527_v55 = vpop.permute.xlu1 %526 }
  0xd5   : > { %v522_v46 = vpop.permute.xlu0 %521 }
  0xd8   : > { %v537_v9 = vpop.permute.xlu1 %536 }
  0xd9   : > { %v532_v35 = vpop.permute.xlu0 %531 }
  0xdd   : > { %v542_v32 = vpop.permute.xlu0 %541 }
 0x136   : > { %v673_v47 = vpop.f32.mrf.mxu0  ;;  %v713_v49 = vpop.f32.mrf.mxu1 }
 0x137   : > { %v674_v10 = vadd.f32 %v673_v47, %v482_v27  ;;  %v714_v50 = vadd.f32 %v713_v49, %v522_v46 }
 0x138   : > { %v675_v53 = vpop.f32.mrf.mxu0  ;;  %v715_v54 = vpop.f32.mrf.mxu1 }
 0x139   : > { %v784_v11 = vmul.f32 0.70710677, %v674_v10  ;;  %v800_v39 = vmul.f32 0.70710677, %v714_v50  ;;  %v676_v43 = vadd.f32 %v675_v53, %v482_v27  ;;  %v716_v51 = vadd.f32 %v715_v54, %v522_v46 }
 0x13a   : > { %v677_v56 = vpop.f32.mrf.mxu0  ;;  %v717_v57 = vpop.f32.mrf.mxu1  ;;  %v752_v25 = vmul.f32 0.5, %v674_v10  ;;  %v768_v30 = vmul.f32 0.5, %v714_v50 }
 0x13b   : > { %1273 = verf.f32 %v784_v11  ;;  %v678_v29 = vadd.f32 %v677_v56, %v487_v34  ;;  %v718_v23 = vadd.f32 %v717_v57, %v527_v55  ;;  %v785_v12 = vmul.f32 0.70710677, %v676_v43 }
 0x13c   : > { %1275 = verf.f32 %v800_v39  ;;  %v679_v8 = vpop.f32.mrf.mxu0  ;;  %v719_v18 = vpop.f32.mrf.mxu1  ;;  %v801_v41 = vmul.f32 0.70710677, %v716_v51  ;;  %v753_v38 = vmul.f32 0.5, %v676_v43 }
 0x13d   : > { %v786_v48 = vmul.f32 0.70710677, %v678_v29  ;;  %1277 = verf.f32 %v785_v12  ;;  %v802_v52 = vmul.f32 0.70710677, %v718_v23  ;;  %v680_v58 = vadd.f32 %v679_v8, %v487_v34 }
 0x13e   : > { %v720_v59 = vadd.f32 %v719_v18, %v527_v55  ;;  %v683_v60 = vpop.f32.mrf.mxu0  ;;  %v723_v61 = vpop.f32.mrf.mxu1  ;;  %1279 = verf.f32 %v801_v41  ;;  %v769_v34 = vmul.f32 0.5, %v716_v51  ;;  %v754_v46 = vmul.f32 0.5, %v678_v29 }
 0x13f   : > { %v684_v62 = vadd.f32 %v683_v60, %v492_v33  ;;  %v1942_v63 = vadd.f32 %v723_v61, %v532_v35  ;;  %1281 = verf.f32 %v786_v48  ;;  %v787_v0 = vmul.f32 0.70710677, %v680_v58 }
 0x140   : > { %v685_v3 = vpop.f32.mrf.mxu0  ;;  %v725_v5 = vpop.f32.mrf.mxu1  ;;  %1283 = verf.f32 %v802_v52  ;;  %v803_v13 = vmul.f32 0.70710677, %v720_v59  ;;  %v770_v54 = vmul.f32 0.5, %v718_v23  ;;  %v755_v11 = vmul.f32 0.5, %v680_v58 }
 0x141   : > { %v788_v14 = vmul.f32 0.70710677, %v684_v62  ;;  %1285 = verf.f32 %v787_v0  ;;  %v804_v15 = vmul.f32 0.70710677, %v1942_v63  ;;  %v1945_v17 = vadd.f32 %v685_v3, %v492_v33 }
 0x142   : > { %v687_v20 = vpop.f32.mrf.mxu0  ;;  %v727_v16 = vpop.f32.mrf.mxu1  ;;  %1287 = verf.f32 %v803_v13  ;;  %v1947_v21 = vadd.f32 %v725_v5, %v532_v35  ;;  %v771_v39 = vmul.f32 0.5, %v720_v59  ;;  %v756_v29 = vmul.f32 0.5, %v684_v62 }
 0x143   : > { %v1950_v22 = vadd.f32 %v687_v20, %v1932_v36  ;;  %v1952_v7 = vadd.f32 %v727_v16, %v537_v9  ;;  %1289 = verf.f32 %v788_v14  ;;  %v789_v19 = vmul.f32 0.70710677, %v1945_v17 }
 0x144   : > { %v689_v24 = vpop.f32.mrf.mxu0  ;;  %v729_v37 = vpop.f32.mrf.mxu1  ;;  %1291 = verf.f32 %v804_v15  ;;  %v805_v31 = vmul.f32 0.70710677, %v1947_v21  ;;  %v772_v14 = vmul.f32 0.5, %v1942_v63  ;;  %v773_v63 = vmul.f32 0.5, %v1947_v21 }
 0x145   : > { %1293 = verf.f32 %v789_v19  ;;  %v790_v4 = vmul.f32 0.70710677, %v1950_v22  ;;  %v806_v6 = vmul.f32 0.70710677, %v1952_v7  ;;  %v1960_v1 = vadd.f32 %v689_v24, %v1932_v36 }
 0x146   : > { %v693_v26 = vpop.f32.mrf.mxu0  ;;  %v733_v28 = vpop.f32.mrf.mxu1  ;;  %1295 = verf.f32 %v805_v31  ;;  %v1962_v2 = vadd.f32 %v729_v37, %v537_v9  ;;  %v757_v37 = vmul.f32 0.5, %v1945_v17 }
 0x147   : > { %v1965_v27 = vadd.f32 %v693_v26, %v1934_v40  ;;  %1297 = verf.f32 %v790_v4  ;;  %v1967_v47 = vadd.f32 %v733_v28, %v542_v32  ;;  %v791_v36 = vmul.f32 0.70710677, %v1960_v1 }
 0x148   : > { %v1274_v33 = vpop.eup %1273  ;;  %v695_v49 = vpop.f32.mrf.mxu0  ;;  %1299 = verf.f32 %v806_v6  ;;  %v807_v43 = vmul.f32 0.70710677, %v1962_v2 }
 0x149   : > { %v735_v10 = vpop.f32.mrf.mxu1  ;;  %v1276_v50 = vpop.eup %1275  ;;  %v848_v53 = vadd.f32 1.0, %v1274_v33  ;;  %1301 = verf.f32 %v791_v36  ;;  %v792_v12 = vmul.f32 0.70710677, %v1965_v27  ;;  %v808_v41 = vmul.f32 0.70710677, %v1967_v47 }
 0x14a   : > { %v864_v55 = vadd.f32 1.0, %v1276_v50  ;;  %v697_v56 = vpop.f32.mrf.mxu0  ;;  %v1278_v51 = vpop.eup %1277  ;;  %1303 = verf.f32 %v807_v43  ;;  %v1979_v59 = vadd.f32 %v695_v49, %v1934_v40  ;;  %v1981_v60 = vadd.f32 %v735_v10, %v542_v32 }
 0x14b   : > { %v880_v57 = vmul.f32 %v848_v53, %v752_v25  ;;  %v737_v8 = vpop.f32.mrf.mxu1  ;;  %v1280_v18 = vpop.eup %1279  ;;  %v849_v23 = vadd.f32 1.0, %v1278_v51  ;;  %1305 = verf.f32 %v792_v12  ;;  %v1985_v3 = vadd.f32 %v697_v56, %v1936_v42 }
 0x14c   : > { %v896_v35 = vmul.f32 %v864_v55, %v768_v30  ;;  %v699_v48 = vpop.f32.mrf.mxu0  ;;  %v1282_v52 = vpop.eup %1281  ;;  %v865_v58 = vadd.f32 1.0, %v1280_v18  ;;  %1307 = verf.f32 %v808_v41  ;;  %v793_v40 = vmul.f32 0.70710677, %v1979_v59 }
 0x14d   : > { %912 = vst [vmem:[%s1975_s26] sm:$0xff] %v880_v57  ;;  %v1284_v61 = vpop.eup %1283  ;;  %v881_v62 = vmul.f32 %v849_v23, %v753_v38  ;;  %v850_v0 = vadd.f32 1.0, %v1282_v52  ;;  %v739_v15 = vpop.f32.mrf.mxu1  ;;  %v809_v25 = vmul.f32 0.70710677, %v1981_v60  ;;  %v794_v32 = vmul.f32 0.70710677, %v1985_v3 }
 0x14e   : > { %928 = vst [vmem:[%s1975_s26 + $0x80] sm:$0xff] %v896_v35  ;;  %v1286_v5 = vpop.eup %1285  ;;  %v897_v9 = vmul.f32 %v865_v58, %v769_v34  ;;  %v866_v13 = vadd.f32 1.0, %v1284_v61  ;;  %v703_v20 = vpop.f32.mrf.mxu0  ;;  %1309 = verf.f32 %v793_v40  ;;  %v2000_v49 = vadd.f32 %v699_v48, %v1936_v42 }
 0x14f   : > { %v1288_v16 = vpop.eup %1287  ;;  %913 = vst [vmem:[%s1975_s26 + $0x8] sm:$0xff] %v881_v62  ;;  %v882_v19 = vmul.f32 %v850_v0, %v754_v46  ;;  %v851_v24 = vadd.f32 1.0, %v1286_v5  ;;  %v547_v6 = vpop.permute.xlu1 %546  ;;  %1311 = verf.f32 %v809_v25  ;;  %v758_v43 = vmul.f32 0.5, %v1950_v22 }
 0x150   : > { %v1290_v30 = vpop.eup %1289  ;;  %929 = vst [vmem:[%s1975_s26 + $0x88] sm:$0xff] %v897_v9  ;;  %v898_v31 = vmul.f32 %v866_v13, %v770_v54  ;;  %v867_v38 = vadd.f32 1.0, %v1288_v16  ;;  %v1997_v46 = vadd.f32 %v737_v8, %v547_v6  ;;  %v743_v21 = vpop.f32.mrf.mxu1  ;;  %1313 = verf.f32 %v794_v32 }
 0x151   : > { %v1292_v4 = vpop.eup %1291  ;;  %914 = vst [vmem:[%s1975_s26 + $0x10] sm:$0xff] %v882_v19  ;;  %v883_v26 = vmul.f32 %v851_v24, %v755_v11  ;;  %v852_v28 = vadd.f32 1.0, %v1290_v30  ;;  %v705_v10 = vpop.f32.mrf.mxu0  ;;  %v2003_v36 = vadd.f32 %v739_v15, %v547_v6  ;;  %v795_v12 = vmul.f32 0.70710677, %v2000_v49 }
 0x152   : > { %v1294_v17 = vpop.eup %1293  ;;  %930 = vst [vmem:[%s1975_s26 + $0x90] sm:$0xff] %v898_v31  ;;  %v899_v33 = vmul.f32 %v867_v38, %v771_v39  ;;  %v868_v34 = vadd.f32 1.0, %v1292_v4  ;;  %v810_v42 = vmul.f32 0.70710677, %v1997_v46  ;;  %v759_v35 = vmul.f32 0.5, %v1960_v1  ;;  %v745_v23 = vpop.f32.mrf.mxu1 }
 0x153   : > { %v1296_v50 = vpop.eup %1295  ;;  %915 = vst [vmem:[%s1975_s26 + $0x18] sm:$0xff] %v883_v26  ;;  %v884_v53 = vmul.f32 %v852_v28, %v756_v29  ;;  %v853_v54 = vadd.f32 1.0, %v1294_v17  ;;  %v774_v29 = vmul.f32 0.5, %v1952_v7  ;;  %v707_v22 = vpop.f32.mrf.mxu0  ;;  %v811_v7 = vmul.f32 0.70710677, %v2003_v36 }
 0x154   : > { %v1298_v55 = vpop.eup %1297  ;;  %931 = vst [vmem:[%s1975_s26 + $0x98] sm:$0xff] %v899_v33  ;;  %v900_v11 = vmul.f32 %v868_v34, %v772_v14  ;;  %v869_v39 = vadd.f32 1.0, %v1296_v50  ;;  %1315 = verf.f32 %v810_v42  ;;  %v552_v48 = vpop.permute.xlu0 %551  ;;  %v2016_v58 = vadd.f32 %v703_v20, %v1938_v44 }
 0x155   : > { %v1300_v56 = vpop.eup %1299  ;;  %916 = vst [vmem:[%s1975_s26 + $0x20] sm:$0xff] %v884_v53  ;;  %v885_v51 = vmul.f32 %v853_v54, %v757_v37  ;;  %v854_v57 = vadd.f32 1.0, %v1298_v55  ;;  %1317 = verf.f32 %v795_v12  ;;  %v2019_v1 = vadd.f32 %v743_v21, %v552_v48  ;;  %v709_v37 = vpop.f32.mrf.mxu0 }
 0x156   : > { %932 = vst [vmem:[%s1975_s26 + $0xa0] sm:$0xff] %v900_v11  ;;  %v901_v8 = vmul.f32 %v869_v39, %v773_v63  ;;  %v870_v18 = vadd.f32 1.0, %v1300_v56  ;;  %v1302_v41 = vpop.eup %1301  ;;  %v2022_v5 = vadd.f32 %v705_v10, %v1938_v44  ;;  %v775_v13 = vmul.f32 0.5, %v1962_v2  ;;  %v747_v44 = vpop.f32.mrf.mxu1 }
 0x157   : > { %917 = vst [vmem:[%s1975_s26 + $0x28] sm:$0xff] %v885_v51  ;;  %v886_v52 = vmul.f32 %v854_v57, %v758_v43  ;;  %v1304_v61 = vpop.eup %1303  ;;  %v855_v0 = vadd.f32 1.0, %v1302_v41  ;;  %1319 = verf.f32 %v811_v7  ;;  %v796_v40 = vmul.f32 0.70710677, %v2016_v58  ;;  %v557_v31 = vpop.permute.xlu1 %556 }
 0x158   : > { %933 = vst [vmem:[%s1975_s26 + $0xa8] sm:$0xff] %v901_v8  ;;  %v902_v62 = vmul.f32 %v870_v18, %v774_v29  ;;  %v1306_v9 = vpop.eup %1305  ;;  %v871_v14 = vadd.f32 1.0, %v1304_v61  ;;  %v760_v16 = vmul.f32 0.5, %v1965_v27  ;;  %v812_v24 = vmul.f32 0.70710677, %v2019_v1  ;;  %v749_v53 = vpop.f32.mrf.mxu1 }
 0x159   : > { %918 = vst [vmem:[%s1975_s26 + $0x30] sm:$0xff] %v886_v52  ;;  %v1308_v15 = vpop.eup %1307  ;;  %v887_v20 = vmul.f32 %v855_v0, %v759_v35  ;;  %v856_v19 = vadd.f32 1.0, %v1306_v9  ;;  %v776_v30 = vmul.f32 0.5, %v1967_v47  ;;  %1321 = verf.f32 %v796_v40 }
 0x15a   : > { %934 = vst [vmem:[%s1975_s26 + $0xb0] sm:$0xff] %v902_v62  ;;  %v903_v25 = vmul.f32 %v871_v14, %v775_v13  ;;  %v872_v2 = vadd.f32 1.0, %v1308_v15  ;;  %1323 = verf.f32 %v812_v24  ;;  %v797_v63 = vmul.f32 0.70710677, %v2022_v5 }
 0x15b   : > { %919 = vst [vmem:[%s1975_s26 + $0x38] sm:$0xff] %v887_v20  ;;  %v888_v38 = vmul.f32 %v856_v19, %v760_v16  ;;  %v2033_v27 = vadd.f32 %v745_v23, %v552_v48  ;;  %v1310_v4 = vpop.eup %1309  ;;  %v2037_v26 = vadd.f32 %v707_v22, %v1940_v45  ;;  %v2039_v28 = vadd.f32 %v747_v44, %v557_v31 }
 0x15c   : > { %935 = vst [vmem:[%s1975_s26 + $0xb8] sm:$0xff] %v903_v25  ;;  %v904_v6 = vmul.f32 %v872_v2, %v776_v30  ;;  %v2042_v47 = vadd.f32 %v709_v37, %v1940_v45  ;;  %v1312_v32 = vpop.eup %1311  ;;  %v761_v17 = vmul.f32 0.5, %v1979_v59  ;;  %v857_v33 = vadd.f32 1.0, %v1310_v4 }
 0x15d   : > { %920 = vst [vmem:[%s1975_s26 + $0x40] sm:$0xff] %v888_v38  ;;  %1325 = verf.f32 %v797_v63  ;;  %v813_v34 = vmul.f32 0.70710677, %v2033_v27  ;;  %v777_v21 = vmul.f32 0.5, %v1981_v60  ;;  %v873_v10 = vadd.f32 1.0, %v1312_v32  ;;  %v1314_v54 = vpop.eup %1313 }
 0x15e   : > { %936 = vst [vmem:[%s1975_s26 + $0xc0] sm:$0xff] %v904_v6  ;;  %v798_v50 = vmul.f32 0.70710677, %v2037_v26  ;;  %v889_v45 = vmul.f32 %v857_v33, %v761_v17  ;;  %v762_v55 = vmul.f32 0.5, %v1985_v3  ;;  %v814_v59 = vmul.f32 0.70710677, %v2039_v28 }
 0x15f   : > { %1327 = verf.f32 %v813_v34  ;;  %v905_v11 = vmul.f32 %v873_v10, %v777_v21  ;;  %v858_v39 = vadd.f32 1.0, %v1314_v54  ;;  %v799_v43 = vmul.f32 0.70710677, %v2042_v47 }
 0x160   : > { %1329 = verf.f32 %v798_v50  ;;  %921 = vst [vmem:[%s1975_s26 + $0x48] sm:$0xff] %v889_v45  ;;  %v750_v60 = vadd.f32 %v749_v53, %v557_v31  ;;  %v778_v3 = vmul.f32 0.5, %v1997_v46  ;;  %v763_v12 = vmul.f32 0.5, %v2000_v49 }
 0x161   : > { %1331 = verf.f32 %v814_v59  ;;  %v1316_v42 = vpop.eup %1315  ;;  %937 = vst [vmem:[%s1975_s26 + $0xc8] sm:$0xff] %v905_v11  ;;  %v890_v56 = vmul.f32 %v858_v39, %v762_v55  ;;  %v779_v22 = vmul.f32 0.5, %v2003_v36  ;;  %v764_v7 = vmul.f32 0.5, %v2016_v58 }
 0x162   : > { %1333 = verf.f32 %v799_v43  ;;  %v1318_v51 = vpop.eup %1317  ;;  %v874_v57 = vadd.f32 1.0, %v1316_v42  ;;  %v815_v29 = vmul.f32 0.70710677, %v750_v60  ;;  %v780_v49 = vmul.f32 0.5, %v2019_v1 }
 0x163   : > { %922 = vst [vmem:[%s1975_s26 + $0x50] sm:$0xff] %v890_v56  ;;  %v859_v8 = vadd.f32 1.0, %v1318_v51  ;;  %v765_v36 = vmul.f32 0.5, %v2022_v5  ;;  %v781_v58 = vmul.f32 0.5, %v2033_v27  ;;  %v766_v19 = vmul.f32 0.5, %v2037_v26 }
 0x164   : > { %v1320_v18 = vpop.eup %1319  ;;  %v906_v35 = vmul.f32 %v874_v57, %v778_v3  ;;  %1335 = verf.f32 %v815_v29  ;;  %v782_v37 = vmul.f32 0.5, %v2039_v28  ;;  %v767_v2 = vmul.f32 0.5, %v2042_v47 }
 0x165   : > { %v891_v23 = vmul.f32 %v859_v8, %v763_v12  ;;  %v875_v41 = vadd.f32 1.0, %v1320_v18  ;;  %v783_v4 = vmul.f32 0.5, %v750_v60 }
 0x166   : > { %v1322_v48 = vpop.eup %1321  ;;  %938 = vst [vmem:[%s1975_s26 + $0xd0] sm:$0xff] %v906_v35 }
 0x167   : > { %v1324_v52 = vpop.eup %1323  ;;  %923 = vst [vmem:[%s1975_s26 + $0x58] sm:$0xff] %v891_v23  ;;  %v907_v46 = vmul.f32 %v875_v41, %v779_v22  ;;  %v860_v61 = vadd.f32 1.0, %v1322_v48 }
 0x168   : > { %v876_v62 = vadd.f32 1.0, %v1324_v52 }
 0x169   : > { %939 = vst [vmem:[%s1975_s26 + $0xd8] sm:$0xff] %v907_v46  ;;  %v892_v9 = vmul.f32 %v860_v61, %v764_v7 }
 0x16a   : > { %v1326_v0 = vpop.eup %1325  ;;  %v908_v13 = vmul.f32 %v876_v62, %v780_v49 }
 0x16b   : > { %v861_v14 = vadd.f32 1.0, %v1326_v0  ;;  %924 = vst [vmem:[%s1975_s26 + $0x60] sm:$0xff] %v892_v9 }
 0x16c   : > { %v1328_v40 = vpop.eup %1327  ;;  %940 = vst [vmem:[%s1975_s26 + $0xe0] sm:$0xff] %v908_v13 }
 0x16d   : > { %v1330_v15 = vpop.eup %1329  ;;  %v893_v20 = vmul.f32 %v861_v14, %v765_v36  ;;  %v877_v1 = vadd.f32 1.0, %v1328_v40 }
 0x16e   : > { %v1332_v16 = vpop.eup %1331  ;;  %v862_v24 = vadd.f32 1.0, %v1330_v15 }
 0x16f   : > { %v1334_v44 = vpop.eup %1333  ;;  %925 = vst [vmem:[%s1975_s26 + $0x68] sm:$0xff] %v893_v20  ;;  %v909_v5 = vmul.f32 %v877_v1, %v781_v58  ;;  %v878_v25 = vadd.f32 1.0, %v1332_v16 }
 0x170   : > { %v894_v30 = vmul.f32 %v862_v24, %v766_v19  ;;  %v863_v31 = vadd.f32 1.0, %v1334_v44 }
 0x171   : > { %941 = vst [vmem:[%s1975_s26 + $0xe8] sm:$0xff] %v909_v5  ;;  %v910_v38 = vmul.f32 %v878_v25, %v782_v37  ;;  %v1336_v63 = vpop.eup %1335 }
 0x172   : > { %926 = vst [vmem:[%s1975_s26 + $0x70] sm:$0xff] %v894_v30  ;;  %v895_v27 = vmul.f32 %v863_v31, %v767_v2  ;;  %v879_v6 = vadd.f32 1.0, %v1336_v63 }
 0x173   : > { %942 = vst [vmem:[%s1975_s26 + $0xf0] sm:$0xff] %v910_v38 }
 0x174   : > { %927 = vst [vmem:[%s1975_s26 + $0x78] sm:$0xff] %v895_v27  ;;  %v911_v26 = vmul.f32 %v879_v6, %v783_v4 }
 0x176   : > { %943 = vst [vmem:[%s1975_s26 + $0xf8] sm:$0xff] %v911_v26 }
 0x177   : > { %1404 = shalt.err (!%p1401_p10)
}
 0x178   : > { %s1405_s13 = scalar_lea.hbm %s2081_s9, 4096  ;;  %s1409_s22 = scalar_lea.hbm %s2135_s3, 8192 }
 0x179   : > { %p1406_p4 = scmp.ne.s32.totalorder %s2081_s9, %s1405_s13  ;;  %p1410_p8 = scmp.lt.s32.totalorder %s2081_s9, %s2135_s3 }
 0x17a   : > { %p1411_p12 = scmp.lt.s32.totalorder %s1409_s22, %s1405_s13 }
 0x17b   : > { %p1407_p13 = pnand %p1406_p4, %p1563_p9 }
 0x17c   : > { %p1412_p0 = por %p1411_p12, %p1410_p8 }
 0x17d   : > { %p1408_p2 = pneg %p1407_p13 }
 0x17f   : > { %p1413_p1 = pnand %p1412_p0, %p1408_p2 }
 0x181   : > { %1416 = shalt.err (!%p1413_p1)
}
 0x182   : > { %s1485_s25 = smov 256   ;;  %s1486_s7 = smov 16  }
 0x183   : > { %1175 = dma.vmem_to_hbm [thread:$0]  (%p1563_p9), %s2083_s5, 4096, %s2081_s9, %s945_s18, %s1485_s25, %s1485_s25, %s1486_s7  }
 0x184 PF: > { %s996_s8 = sand.u32 1, %s1455_s15   ;;  %p2142_p3 = scmp.ge.s32.totalorder %s1475_s20, 2 }
 0x185   : > { %s997_s27 = scalar_lea.sflag [#allocation4], %s996_s8 }
 0x186   : > { %p1184_p5 = pnand %p2142_p3, %p1570_p11 }
 0x188   : > { %p1185_p6 = pneg %p1184_p5 }
 0x18a   : > { %1446 = dma.done.wait (%p1185_p6), %s997_s27, 4096  }
 0x18b   : > { %1448 = vsyncadd (%p1185_p6), %s997_s27, 4294963200  ;;  %s1006_s10 = scalar_lea.sflag [#allocation7], %s996_s8 }
 0x18c   : > { %1450 = dma.done.wait (%p1185_p6), %s1006_s10, 32  }
 0x18d   : > { %1452 = vsyncadd (%p1185_p6), %s1006_s10, 4294967264  ;;  %s24_s20 = sadd.s32 1, %s1475_s20   ;;  %s2143_s15 = smov %s1459_s16 }
 0x18e   : > { %p21_p7 = scmp.ge.s32.totalorder %s24_s20, 4   ;;  %s2144_s16 = smov %s1463_s17 }
 0x18f   : > { %s2145_s17 = smov %s1568_s29  ;;  %s2146_s18 = smov %s1471_s19 }
 0x190   : > { %s2147_s19 = smov %s2149_s23  ;;  %23 = sbr.rel (!%p21_p7) target bundleno = 8 (0x8), region = 94 }
 0x195   :  { %1011 = vsyncpa [#allocation3], 1 }
 0x196   :  { %1013 = vsyncpa [#allocation3 + $0x1], 1 }
 0x197   :  { %1014 = vsyncpa [#allocation4], 1 }
 0x198   :  { %1016 = vsyncpa [#allocation4 + $0x1], 1 }
 0x199   :  { %1017 = vsyncpa [#allocation7], 1 }
 0x19a   :  { %1019 = vsyncpa [#allocation7 + $0x1], 1 }

</bundles_post_ra>
